<compile_context>
chip_gen: v7x
topology: tpu7x:2x2x1
jax: 0.10.0
libtpu: 0.0.40
codegen_flags: <defaults>
</compile_context>

<pallas_src>
import jax
import jax.numpy as jnp
from jax.experimental import pallas as pl
from jax.experimental.pallas import tpu as pltpu


def _round_up(x, m):
    return ((x + m - 1) // m) * m


# Contract the last (feature) dims of both operands: result = lhs @ rhs^T.
_NT = (((1,), (1,)), ((), ()))


def _decoder_kernel(x1_ref, x2_ref, w1a_ref, w1b_ref, b1_ref, w2_ref, b2_ref, o_ref):
    # x1_ref : [TILE_B, dim1]   streamed, natural layout
    # x2_ref : [TILE_B, dim2]   streamed, natural layout
    # w1a_ref: [dim3, dim1]     resident (W1[:dim1].T)
    # w1b_ref: [dim3, dim2]     resident (W1[dim1:].T)
    # b1_ref : [dim3, 1]        resident
    # w2_ref : [dim3, 1]        resident
    # b2_ref : [1, 1]           resident
    # o_ref  : [1, TILE_B]      lane-dense output row

    # Layer 1 (MergeLayer fc1) in transposed orientation:
    #   h^T = W1a^T . x1^T + W1b^T . x2^T + b1
    # The NT dots contract the feature dims so the big streamed tiles are used
    # as-is (no wrapper/kernel transpose of x).
    ht = jax.lax.dot_general(
        w1a_ref[...], x1_ref[...], _NT, preferred_element_type=jnp.float32)
    ht = ht + jax.lax.dot_general(
        w1b_ref[...], x2_ref[...], _NT, preferred_element_type=jnp.float32)
    ht = jnp.maximum(ht + b1_ref[...], 0.0)                 # ReLU, [dim3, TILE_B]

    # Layer 2 (MergeLayer fc2, out_features == 1): VPU multiply + sublane
    # reduction (f32) instead of an N=1 MXU matmul.
    s = jnp.sum(ht * w2_ref[...], axis=0, keepdims=True) + b2_ref[...]   # [1, TILE_B]

    # sigmoid (EUP) + unmasked, lane-dense store.
    o_ref[...] = jax.nn.sigmoid(s).astype(o_ref.dtype)


def tgat_decoder(x1, x2, w1, b1, w2, b2, *, block_b=16384):
    """Pallas implementation of TGATDecoder.forward.

    x1: [B, dim1], x2: [B, dim2]
    w1: [dim1 + dim2, dim3], b1: [dim3]
    w2: [dim3, 1] (or [dim3]),  b2: [1]
    Returns sigmoid scores of shape [B] (the squeeze(-1) happens here).
    """
    B, dim1 = x1.shape
    B2, dim2 = x2.shape
    assert B == B2, (x1.shape, x2.shape)
    dim_in = dim1 + dim2
    dim3 = w1.shape[1]
    assert w1.shape[0] == dim_in, (w1.shape, dim_in)
    dim4 = w2.shape[-1] if w2.ndim == 2 else 1
    assert dim4 == 1, "TGATDecoder squeezes the last dim; dim4 must be 1"

    # Stream activations in their incoming dtype (bf16 halves HBM bytes of this
    # bandwidth-bound kernel); f32 inputs are bit-exact vs. the f32 reference.
    in_dtype = jnp.result_type(x1.dtype, x2.dtype)
    x1 = x1.astype(in_dtype)
    x2 = x2.astype(in_dtype)
    in_itemsize = jnp.dtype(in_dtype).itemsize

    # Batch padding: 128-lane alignment only (no-op when B is already aligned;
    # never padded to a tile multiple).  Padded rows are zeros; their finite
    # scores exist only in the padded output columns, which are sliced off.
    b_pad = _round_up(B, 128)
    if b_pad != B:
        x1 = jnp.pad(x1, ((0, b_pad - B), (0, 0)))
        x2 = jnp.pad(x2, ((0, b_pad - B), (0, 0)))

    # Generation-aware VMEM budget (v7x: 64 MiB/TensorCore; v5e/v6e: 128 MiB).
    try:
        vmem_cap = int(pltpu.get_tpu_info().vmem_capacity_bytes)
    except Exception:  # pragma: no cover - conservative fallback
        vmem_cap = 64 * 1024 * 1024
    vmem_limit = int(min((vmem_cap * 3) // 4, 96 * 1024 * 1024))

    # Rough per-batch-lane VMEM cost: double-buffered x1+x2 streams, f32 h^T
    # plus elementwise temporaries, double-buffered [1, tile_b] output row.
    per_lane = 2 * dim_in * in_itemsize + 3 * dim3 * 4 + 2 * 4
    vmem_tile_cap = max(128, ((vmem_limit - (2 << 20)) // per_lane) // 128 * 128)

    tile_b = min(_round_up(block_b, 128), b_pad, vmem_tile_cap)
    if b_pad >= 256:
        # Guarantee >= 2 grid steps so the "parallel" axis can be sharded
        # across both v7x TensorCores (no-op on single-TC v5e/v6e).
        tile_b = min(tile_b, _round_up(b_pad // 2, 128))
    num_tiles = pl.cdiv(b_pad, tile_b)

    # Small resident operands (layout plumbing on tiny arrays only).
    w1a_t = w1[:dim1, :].T.astype(in_dtype)             # [dim3, dim1]
    w1b_t = w1[dim1:, :].T.astype(in_dtype)             # [dim3, dim2]
    b1c = b1.reshape(dim3, 1).astype(jnp.float32)       # [dim3, 1]
    w2c = w2.reshape(dim3, 1).astype(jnp.float32)       # [dim3, 1]
    b2c = b2.reshape(1, 1).astype(jnp.float32)          # [1, 1]

    cost = pl.CostEstimate(
        flops=2 * b_pad * dim_in * dim3 + 5 * b_pad * dim3 + 4 * b_pad,
        transcendentals=b_pad,
        bytes_accessed=(in_itemsize * b_pad * dim_in + 4 * b_pad
                        + in_itemsize * dim_in * dim3 + 4 * (2 * dim3 + 1)),
    )

    out = pl.pallas_call(
        _decoder_kernel,
        out_shape=jax.ShapeDtypeStruct((1, b_pad), jnp.float32),
        grid=(num_tiles,),
        in_specs=[
            pl.BlockSpec((tile_b, dim1), lambda i: (i, 0)),  # x1   : streamed
            pl.BlockSpec((tile_b, dim2), lambda i: (i, 0)),  # x2   : streamed
            pl.BlockSpec((dim3, dim1), lambda i: (0, 0)),    # W1a^T: resident
            pl.BlockSpec((dim3, dim2), lambda i: (0, 0)),    # W1b^T: resident
            pl.BlockSpec((dim3, 1), lambda i: (0, 0)),       # b1   : resident
            pl.BlockSpec((dim3, 1), lambda i: (0, 0)),       # w2   : resident
            pl.BlockSpec((1, 1), lambda i: (0, 0)),          # b2   : resident
        ],
        out_specs=pl.BlockSpec((1, tile_b), lambda i: (0, i)),
        compiler_params=pltpu.CompilerParams(
            dimension_semantics=("parallel",),
            vmem_limit_bytes=vmem_limit,
        ),
        cost_estimate=cost,
    )(x1, x2, w1a_t, w1b_t, b1c, w2c, b2c)

    # squeeze(dim=-1) from the PyTorch forward + drop any 128-alignment padding.
    return out[0, :B]


def _reference(x1, x2, w1, b1, w2, b2):
    x = jnp.concatenate([x1, x2], axis=-1)
    h = jnp.maximum(x @ w1 + b1, 0.0)
    s = (h @ w2.reshape(-1, 1) + b2)[:, 0]
    return jax.nn.sigmoid(s)


if __name__ == "__main__":
    # Small shapes consistent with the module: dim1=dim2=dim3=32, dim4=1, batch=8.
    B, dim1, dim2, dim3, dim4 = 8, 32, 32, 32, 1

    key = jax.random.PRNGKey(0)
    k_x1, k_x2, k_w1, k_b1, k_w2, k_b2 = jax.random.split(key, 6)

    x1 = jax.random.normal(k_x1, (B, dim1), dtype=jnp.float32)
    x2 = jax.random.normal(k_x2, (B, dim2), dtype=jnp.float32)

    # Deterministic synthetic parameters (xavier-ish scaling).
    w1 = jax.random.normal(k_w1, (dim1 + dim2, dim3), dtype=jnp.float32) * (
        1.0 / jnp.sqrt(dim1 + dim2)
    )
    b1 = jax.random.normal(k_b1, (dim3,), dtype=jnp.float32) * 0.01
    w2 = jax.random.normal(k_w2, (dim3, dim4), dtype=jnp.float32) * (
        1.0 / jnp.sqrt(dim3)
    )
    b2 = jax.random.normal(k_b2, (dim4,), dtype=jnp.float32) * 0.01

    # f32 path, single 128-lane tile.
    out = jax.block_until_ready(tgat_decoder(x1, x2, w1, b1, w2, b2))
    ref = _reference(x1, x2, w1, b1, w2, b2)
    assert out.shape == (B,), out.shape
    assert jnp.allclose(out, ref, atol=1e-5, rtol=1e-5), (out, ref)

    # Multi-tile f32 path (B=256 -> two 128-lane tiles; exercises the
    # >=2-grid-step split used to engage both v7x TensorCores).
    B_big = 256
    kx1b, kx2b = jax.random.split(jax.random.PRNGKey(1), 2)
    x1b = jax.random.normal(kx1b, (B_big, dim1), dtype=jnp.float32)
    x2b = jax.random.normal(kx2b, (B_big, dim2), dtype=jnp.float32)
    out_b = jax.block_until_ready(tgat_decoder(x1b, x2b, w1, b1, w2, b2))
    ref_b = _reference(x1b, x2b, w1, b1, w2, b2)
    assert out_b.shape == (B_big,), out_b.shape
    assert jnp.allclose(out_b, ref_b, atol=1e-5, rtol=1e-5), (out_b, ref_b)

    # bf16-streamed path (halves HBM bytes; f32 accumulation -> looser tolerance).
    out_bf16 = jax.block_until_ready(
        tgat_decoder(x1.astype(jnp.bfloat16), x2.astype(jnp.bfloat16), w1, b1, w2, b2)
    )
    assert jnp.allclose(out_bf16, ref, atol=2e-2, rtol=2e-2), (out_bf16, ref)

    print("KERNEL_OK")
</pallas_src>

<mosaic_0001>
module attributes {stable_mosaic.version = 11 : i64} {
  func.func @_decoder_kernel(%arg0: i32, %arg1: memref<128x32xf32, #tpu.memory_space<vmem>>, %arg2: memref<128x32xf32, #tpu.memory_space<vmem>>, %arg3: memref<32x32xf32, #tpu.memory_space<vmem>>, %arg4: memref<32x32xf32, #tpu.memory_space<vmem>>, %arg5: memref<32x1xf32, #tpu.memory_space<vmem>>, %arg6: memref<32x1xf32, #tpu.memory_space<vmem>>, %arg7: memref<1x1xf32, #tpu.memory_space<vmem>>, %arg8: memref<1x128xf32, #tpu.memory_space<vmem>>) attributes {dimension_semantics = [#tpu.dimension_semantics<parallel>], iteration_bounds = array<i64: 1>, scalar_prefetch = 0 : i64, scratch_operands = 0 : i64, tpu.core_type = #tpu.core_type<tc>, window_params = [{transform_indices = @transform_0, window_bounds = array<i64: 128, 32>}, {transform_indices = @transform_1, window_bounds = array<i64: 128, 32>}, {pipeline_mode = #tpu.pipeline_mode<synchronous>, transform_indices = @transform_2, window_bounds = array<i64: 32, 32>}, {pipeline_mode = #tpu.pipeline_mode<synchronous>, transform_indices = @transform_3, window_bounds = array<i64: 32, 32>}, {pipeline_mode = #tpu.pipeline_mode<synchronous>, transform_indices = @transform_4, window_bounds = array<i64: 32, 1>}, {pipeline_mode = #tpu.pipeline_mode<synchronous>, transform_indices = @transform_5, window_bounds = array<i64: 32, 1>}, {pipeline_mode = #tpu.pipeline_mode<synchronous>, transform_indices = @transform_6, window_bounds = array<i64: 1, 1>}, {transform_indices = @transform_7, window_bounds = array<i64: 1, 128>}]} {
    %c0 = arith.constant 0 : index
    %c0_0 = arith.constant 0 : index
    %0 = vector.load %arg3[%c0, %c0_0] : memref<32x32xf32, #tpu.memory_space<vmem>>, vector<32x32xf32>
    %c0_1 = arith.constant 0 : index
    %c0_2 = arith.constant 0 : index
    %1 = vector.load %arg1[%c0_1, %c0_2] : memref<128x32xf32, #tpu.memory_space<vmem>>, vector<128x32xf32>
    %cst = arith.constant dense<0.000000e+00> : vector<32x128xf32>
    %2 = tpu.matmul %0, %1, %cst {dimension_numbers = #tpu.dot_dimension_numbers<[1], [1], [0], [0], [0, 0, 1, 0], [], []>} : vector<32x32xf32>, vector<128x32xf32>, vector<32x128xf32> -> vector<32x128xf32>
    %c0_3 = arith.constant 0 : index
    %c0_4 = arith.constant 0 : index
    %3 = vector.load %arg4[%c0_3, %c0_4] : memref<32x32xf32, #tpu.memory_space<vmem>>, vector<32x32xf32>
    %c0_5 = arith.constant 0 : index
    %c0_6 = arith.constant 0 : index
    %4 = vector.load %arg2[%c0_5, %c0_6] : memref<128x32xf32, #tpu.memory_space<vmem>>, vector<128x32xf32>
    %cst_7 = arith.constant dense<0.000000e+00> : vector<32x128xf32>
    %5 = tpu.matmul %3, %4, %cst_7 {dimension_numbers = #tpu.dot_dimension_numbers<[1], [1], [0], [0], [0, 0, 1, 0], [], []>} : vector<32x32xf32>, vector<128x32xf32>, vector<32x128xf32> -> vector<32x128xf32>
    %6 = arith.addf %2, %5 : vector<32x128xf32>
    %c0_8 = arith.constant 0 : index
    %c0_9 = arith.constant 0 : index
    %7 = vector.load %arg5[%c0_8, %c0_9] : memref<32x1xf32, #tpu.memory_space<vmem>>, vector<32x1xf32>
    %8 = vector.broadcast %7 : vector<32x1xf32> to vector<32x128xf32>
    %9 = arith.addf %6, %8 : vector<32x128xf32>
    %cst_10 = arith.constant 0.000000e+00 : f32
    %10 = vector.broadcast %cst_10 : f32 to vector<32x128xf32>
    %11 = arith.maximumf %9, %10 : vector<32x128xf32>
    %c0_11 = arith.constant 0 : index
    %c0_12 = arith.constant 0 : index
    %12 = vector.load %arg6[%c0_11, %c0_12] : memref<32x1xf32, #tpu.memory_space<vmem>>, vector<32x1xf32>
    %13 = vector.broadcast %12 : vector<32x1xf32> to vector<32x128xf32>
    %14 = arith.mulf %11, %13 : vector<32x128xf32>
    %cst_13 = arith.constant dense<0.000000e+00> : vector<128xf32>
    %15 = vector.multi_reduction <add>, %14, %cst_13 [0] : vector<32x128xf32> to vector<128xf32>
    %16 = vector.shape_cast %15 : vector<128xf32> to vector<1x128xf32>
    %c0_14 = arith.constant 0 : index
    %c0_15 = arith.constant 0 : index
    %17 = vector.load %arg7[%c0_14, %c0_15] : memref<1x1xf32, #tpu.memory_space<vmem>>, vector<1x1xf32>
    %18 = vector.broadcast %17 : vector<1x1xf32> to vector<1x128xf32>
    %19 = arith.addf %16, %18 : vector<1x128xf32>
    %20 = arith.negf %19 : vector<1x128xf32>
    %21 = math.exp %20 : vector<1x128xf32>
    %cst_16 = arith.constant 1.000000e+00 : f32
    %22 = vector.broadcast %cst_16 : f32 to vector<1x128xf32>
    %23 = arith.addf %22, %21 : vector<1x128xf32>
    %24 = arith.divf %22, %23 : vector<1x128xf32>
    %c0_17 = arith.constant 0 : index
    %c0_18 = arith.constant 0 : index
    %25 = vector.load %arg8[%c0_17, %c0_18] : memref<1x128xf32, #tpu.memory_space<vmem>>, vector<1x128xf32>
    tpu.vector_store %arg8[%c0_17, %c0_18], %24 {strides = array<i32>} : memref<1x128xf32, #tpu.memory_space<vmem>>, vector<1x128xf32>,
    return
  }
  func.func @transform_0(%arg0: i32) -> (i32, i32) {
    %c0_i32 = arith.constant 0 : i32
    %c0_i32_0 = arith.constant 0 : i32
    return %arg0, %c0_i32 : i32, i32
  }
  func.func @transform_1(%arg0: i32) -> (i32, i32) {
    %c0_i32 = arith.constant 0 : i32
    %c0_i32_0 = arith.constant 0 : i32
    return %arg0, %c0_i32 : i32, i32
  }
  func.func @transform_2(%arg0: i32) -> (i32, i32) {
    %c0_i32 = arith.constant 0 : i32
    %c0_i32_0 = arith.constant 0 : i32
    %c0_i32_1 = arith.constant 0 : i32
    return %c0_i32, %c0_i32_0 : i32, i32
  }
  func.func @transform_3(%arg0: i32) -> (i32, i32) {
    %c0_i32 = arith.constant 0 : i32
    %c0_i32_0 = arith.constant 0 : i32
    %c0_i32_1 = arith.constant 0 : i32
    return %c0_i32, %c0_i32_0 : i32, i32
  }
  func.func @transform_4(%arg0: i32) -> (i32, i32) {
    %c0_i32 = arith.constant 0 : i32
    %c0_i32_0 = arith.constant 0 : i32
    %c0_i32_1 = arith.constant 0 : i32
    return %c0_i32, %c0_i32_0 : i32, i32
  }
  func.func @transform_5(%arg0: i32) -> (i32, i32) {
    %c0_i32 = arith.constant 0 : i32
    %c0_i32_0 = arith.constant 0 : i32
    %c0_i32_1 = arith.constant 0 : i32
    return %c0_i32, %c0_i32_0 : i32, i32
  }
  func.func @transform_6(%arg0: i32) -> (i32, i32) {
    %c0_i32 = arith.constant 0 : i32
    %c0_i32_0 = arith.constant 0 : i32
    %c0_i32_1 = arith.constant 0 : i32
    return %c0_i32, %c0_i32_0 : i32, i32
  }
  func.func @transform_7(%arg0: i32) -> (i32, i32) {
    %c0_i32 = arith.constant 0 : i32
    %c0_i32_0 = arith.constant 0 : i32
    return %c0_i32, %arg0 : i32, i32
  }
}

</mosaic_0001>

<bundles_post_ra>
// kernel: tpu_custom_call.1
= control target key start
LH: loop header
LB: loop body
LE: loop exit
PB: predicated region body
PF: predicated region fallthrough
CT: control target
= control target key end

     0   :  { %s1029_s0 = inlined_call_operand.vmem [shape: f32[128,32], index: 0, kind: input, shape index: {}]   ;;  %s1030_s1 = inlined_call_operand.vmem [shape: f32[128,32], index: 1, kind: input, shape index: {}]   ;;  %s1031_s2 = inlined_call_operand.vmem [shape: f32[32,32], index: 2, kind: input, shape index: {}]   ;;  %s1032_s3 = inlined_call_operand.vmem [shape: f32[32,32], index: 3, kind: input, shape index: {}]   ;;  %s1033_s4 = inlined_call_operand.vmem [shape: f32[32,1], index: 4, kind: input, shape index: {}]   ;;  %s1034_s5 = inlined_call_operand.vmem [shape: f32[32,1], index: 5, kind: input, shape index: {}]   ;;  %s1035_s6 = inlined_call_operand.<no memory space> [shape: f32[1,1], index: 6, kind: input, shape index: {}]   ;;  %s1036_s7 = inlined_call_operand.hbm [shape: f32[1,128], index: 7, kind: output, shape index: {}]  }
   0x1   :  { %v12_v0 = vstv %s1035_s6 }
   0x2   :  { %13 = vst [vmem:[#allocation2] sm:$0x1] %v12_v0 }
   0x3   :  { %v53_v1 = vld [vmem:[%s1030_s1] sm:$0xff]  ;;  %v54_v2 = vld [vmem:[%s1030_s1 + $0x8] sm:$0xff]  ;;  %vm69_vm0 = vcmask 261120   ;;  %v55_v7 = vld [vmem:[%s1030_s1 + $0x10] sm:$0xff]  ;;  %v750_v8 = vmov 0  }
   0x4   :  { %v33_v3 = vld [vmem:[%s1029_s0] sm:$0xff]  ;;  %v618_v4 = vpack.c.bf16 %v54_v2, %v53_v1  ;;  %vm806_vm1 = vmpackc.low %vm69_vm0, %vm69_vm0  ;;  %v34_v6 = vld [vmem:[%s1029_s0 + $0x8] sm:$0xff]  ;;  %720 = vset.pattern.permute.xlu0 %v750_v8  ;;  %721 = vset.pattern.permute.xlu1 %v750_v8 }
   0x5   :  { %v666_v9 = vpack.c.bf16 %v34_v6, %v33_v3  ;;  %v56_v10 = vld [vmem:[%s1030_s1 + $0x18] sm:$0xff]  ;;  %v35_v11 = vld [vmem:[%s1029_s0 + $0x10] sm:$0xff]  ;;  %v57_v15 = vld [vmem:[%s1030_s1 + $0x20] sm:$0xff] }
   0x6   :  { %v36_v12 = vld [vmem:[%s1029_s0 + $0x18] sm:$0xff]  ;;  %620 = vmatprep.subr.msk.bf16.mxu1 %vm806_vm1, %v618_v4  ;;  %v624_v13 = vpack.c.bf16 %v56_v10, %v55_v7  ;;  %v58_v16 = vld [vmem:[%s1030_s1 + $0x28] sm:$0xff]  ;;  %v37_v17 = vld [vmem:[%s1029_s0 + $0x20] sm:$0xff] }
   0x7   :  { %v672_v14 = vpack.c.bf16 %v36_v12, %v35_v11  ;;  %668 = vmatprep.subr.msk.bf16.mxu0 %vm806_vm1, %v666_v9  ;;  %623 = vmatpush3.bf16.xpose.msk.msra.mxu1 %vm806_vm1, %v618_v4  ;;  %v38_v18 = vld [vmem:[%s1029_s0 + $0x28] sm:$0xff]  ;;  %v630_v19 = vpack.c.bf16 %v58_v16, %v57_v15  ;;  %v49_v21 = vld [vmem:[%s1032_s3] sm:$0xff]  ;;  %v59_v24 = vld [vmem:[%s1030_s1 + $0x30] sm:$0xff] }
   0x8   :  { %671 = vmatpush3.bf16.xpose.msk.msra.mxu0 %vm806_vm1, %v666_v9  ;;  %626 = vmatprep.subr.msk.bf16.mxu1 %vm806_vm1, %v624_v13  ;;  %v678_v20 = vpack.c.bf16 %v38_v18, %v37_v17  ;;  %v29_v22 = vld [vmem:[%s1031_s2] sm:$0xff]  ;;  %v60_v25 = vld [vmem:[%s1030_s1 + $0x38] sm:$0xff]  ;;  %v362_v26 = vld [vmem:[%s1033_s4 + $0x10] sm:$0xff] }
   0x9   :  { %674 = vmatprep.subr.msk.bf16.mxu0 %vm806_vm1, %v672_v14  ;;  %574 = vmatprep.mubr.msk.f32.mxu1 %vm69_vm0, %v49_v21  ;;  %v360_v23 = vld [vmem:[%s1033_s4] sm:$0xff]  ;;  %v39_v27 = vld [vmem:[%s1029_s0 + $0x30] sm:$0xff]  ;;  %v40_v28 = vld [vmem:[%s1029_s0 + $0x38] sm:$0xff] }
   0xa   :  { %612 = vmatprep.mubr.msk.f32.mxu0 %vm69_vm0, %v29_v22  ;;  %366 = vperm.xlu0 %720, %v360_v23   ;;  %v361_v29 = vld [vmem:[%s1033_s4 + $0x8] sm:$0xff]  ;;  %v363_v30 = vld [vmem:[%s1033_s4 + $0x18] sm:$0xff] }
   0xb   :  { %376 = vperm.xlu1 %721, %v362_v26  }
   0xf   :  { %629 = vmatpush3.bf16.xpose.msk.msra.mxu1 %vm806_vm1, %v624_v13 }
  0x10   :  { %677 = vmatpush3.bf16.xpose.msk.msra.mxu0 %vm806_vm1, %v672_v14  ;;  %632 = vmatprep.subr.msk.bf16.mxu1 %vm806_vm1, %v630_v19 }
  0x11   :  { %680 = vmatprep.subr.msk.bf16.mxu0 %vm806_vm1, %v678_v20 }
  0x12   :  { %14 = vsyncpa [#allocation4], 0  ;;  %v636_v31 = vpack.c.bf16 %v60_v25, %v59_v24  ;;  %v684_v32 = vpack.c.bf16 %v40_v28, %v39_v27  ;;  %371 = vperm.xlu0 %720, %v361_v29   ;;  %381 = vperm.xlu1 %721, %v363_v30   ;;  %v392_v33 = vld [vmem:[%s1034_s5] sm:$0xff]  ;;  %v393_v34 = vld [vmem:[%s1034_s5 + $0x8] sm:$0xff] }
  0x13   :  { %v61_v35 = vld [vmem:[%s1030_s1 + $0x40] sm:$0xff]  ;;  %v62_v36 = vld [vmem:[%s1030_s1 + $0x48] sm:$0xff]  ;;  %v394_v39 = vld [vmem:[%s1034_s5 + $0x10] sm:$0xff] }
  0x14   :  { %v41_v37 = vld [vmem:[%s1029_s0 + $0x40] sm:$0xff]  ;;  %v42_v38 = vld [vmem:[%s1029_s0 + $0x48] sm:$0xff]  ;;  %v395_v40 = vld [vmem:[%s1034_s5 + $0x18] sm:$0xff]  ;;  %v642_v41 = vpack.c.bf16 %v62_v36, %v61_v35 }
  0x15   :  { %v690_v42 = vpack.c.bf16 %v42_v38, %v41_v37  ;;  %v429_v43 = vld [vmem:[#allocation2] sm:$0x1]  ;;  %v63_v44 = vld [vmem:[%s1030_s1 + $0x50] sm:$0xff]  ;;  %v64_v45 = vld [vmem:[%s1030_s1 + $0x58] sm:$0xff]  ;;  %v435_v38 = vlaneseq }
  0x16   :  { %398 = vperm.xlu0 %720, %v392_v33   ;;  %403 = vperm.xlu1 %721, %v393_v34   ;;  %v43_v46 = vld [vmem:[%s1029_s0 + $0x50] sm:$0xff]  ;;  %v44_v47 = vld [vmem:[%s1029_s0 + $0x58] sm:$0xff]  ;;  %v648_v48 = vpack.c.bf16 %v64_v45, %v63_v44  ;;  %v65_v50 = vld [vmem:[%s1030_s1 + $0x60] sm:$0xff] }
  0x17   :  { %635 = vmatpush3.bf16.xpose.msk.msra.mxu1 %vm806_vm1, %v630_v19  ;;  %v696_v49 = vpack.c.bf16 %v44_v47, %v43_v46  ;;  %v66_v51 = vld [vmem:[%s1030_s1 + $0x68] sm:$0xff]  ;;  %v45_v52 = vld [vmem:[%s1029_s0 + $0x60] sm:$0xff]  ;;  %v67_v56 = vld [vmem:[%s1030_s1 + $0x70] sm:$0xff] }
  0x18   :  { %683 = vmatpush3.bf16.xpose.msk.msra.mxu0 %vm806_vm1, %v678_v20  ;;  %638 = vmatprep.subr.msk.bf16.mxu1 %vm806_vm1, %v636_v31  ;;  %v46_v53 = vld [vmem:[%s1029_s0 + $0x68] sm:$0xff]  ;;  %v654_v54 = vpack.c.bf16 %v66_v51, %v65_v50  ;;  %v68_v57 = vld [vmem:[%s1030_s1 + $0x78] sm:$0xff]  ;;  %v47_v58 = vld [vmem:[%s1029_s0 + $0x70] sm:$0xff] }
  0x19   :  { %686 = vmatprep.subr.msk.bf16.mxu0 %vm806_vm1, %v684_v32  ;;  %v702_v55 = vpack.c.bf16 %v46_v53, %v45_v52  ;;  %v48_v59 = vld [vmem:[%s1029_s0 + $0x78] sm:$0xff]  ;;  %v660_v60 = vpack.c.bf16 %v68_v57, %v67_v56  ;;  %v50_v62 = vld [vmem:[%s1032_s3 + $0x8] sm:$0xff]  ;;  %v51_v0 = vld [vmem:[%s1032_s3 + $0x10] sm:$0xff] }
  0x1a   :  { %408 = vperm.xlu0 %720, %v394_v39   ;;  %413 = vperm.xlu1 %721, %v395_v40   ;;  %v708_v61 = vpack.c.bf16 %v48_v59, %v47_v58  ;;  %v30_v63 = vld [vmem:[%s1031_s2 + $0x8] sm:$0xff]  ;;  %v31_v1 = vld [vmem:[%s1031_s2 + $0x10] sm:$0xff]  ;;  %v52_v2 = vld [vmem:[%s1032_s3 + $0x18] sm:$0xff] }
  0x1b   :  { %v32_v3 = vld [vmem:[%s1031_s2 + $0x18] sm:$0xff]  ;;  %s751_s2 = smov [#allocation3]  }
  0x1c   :  { %s453_s3 = sshll.u32 %s751_s2, 4  ;;  %s454_s3 = int_to_ptr.vmem [resolvable:$true] %s453_s3 }
  0x1d   :  { %s726_s20 = scalar_lea.vmem %s454_s3, 16  ;;  %s730_s21 = scalar_lea.vmem %s454_s3, 32 }
  0x1e   :  { %432 = vperm.xlu0 %720, %v429_v43   ;;  %p727_p0 = scmp.ne.s32.totalorder %s454_s3, %s726_s20  ;;  %p731_p1 = scmp.lt.s32.totalorder %s454_s3, %s454_s3 }
  0x1f   :  { %641 = vmatpush3.bf16.xpose.msk.msra.mxu1 %vm806_vm1, %v636_v31  ;;  %p732_p2 = scmp.lt.s32.totalorder %s730_s21, %s726_s20 }
  0x20   :  { %689 = vmatpush3.bf16.xpose.msk.msra.mxu0 %vm806_vm1, %v684_v32  ;;  %644 = vmatprep.subr.msk.bf16.mxu1 %vm806_vm1, %v642_v41 }
  0x21   :  { %692 = vmatprep.subr.msk.bf16.mxu0 %vm806_vm1, %v690_v42  ;;  %p733_p3 = por %p732_p2, %p731_p1 }
  0x23   :  { %p734_p4 = pnand %p733_p3, %p727_p0 }
  0x27   :  { %647 = vmatpush3.bf16.xpose.msk.msra.mxu1 %vm806_vm1, %v642_v41  ;;  %v436_v41 = vshrl.u32 %v435_v38, 7 }
  0x28   :  { %695 = vmatpush3.bf16.xpose.msk.msra.mxu0 %vm806_vm1, %v690_v42  ;;  %650 = vmatprep.subr.msk.bf16.mxu1 %vm806_vm1, %v648_v48 }
  0x29   :  { %698 = vmatprep.subr.msk.bf16.mxu0 %vm806_vm1, %v696_v49  ;;  %v437_v44 = vsub.s32 0, %v436_v41 }
  0x2f   :  { %653 = vmatpush3.bf16.xpose.msk.msra.mxu1 %vm806_vm1, %v648_v48 }
  0x30   :  { %701 = vmatpush3.bf16.xpose.msk.msra.mxu0 %vm806_vm1, %v696_v49  ;;  %656 = vmatprep.subr.msk.bf16.mxu1 %vm806_vm1, %v654_v54 }
  0x31   :  { %704 = vmatprep.subr.msk.bf16.mxu0 %vm806_vm1, %v702_v55 }
  0x37   :  { %659 = vmatpush3.bf16.xpose.msk.msra.mxu1 %vm806_vm1, %v654_v54 }
  0x38   :  { %707 = vmatpush3.bf16.xpose.msk.msra.mxu0 %vm806_vm1, %v702_v55  ;;  %662 = vmatprep.subr.msk.bf16.mxu1 %vm806_vm1, %v660_v60 }
  0x39   :  { %710 = vmatprep.subr.msk.bf16.mxu0 %vm806_vm1, %v708_v61 }
  0x3f   :  { %665 = vmatpush3.bf16.xpose.msk.msra.mxu1 %vm806_vm1, %v660_v60 }
  0x40   :  { %713 = vmatpush3.bf16.xpose.msk.msra.mxu0 %vm806_vm1, %v708_v61 }
  0x46   :  { %575 = vmatmul.mubr.msk.f32.vlgmr.msra.gmra.mrb[0].mxu1 %vm69_vm0, %v50_v62 }
  0x47   :  { %613 = vmatmul.mubr.msk.f32.vlgmr.msra.gmra.mrb[0].mxu0 %vm69_vm0, %v30_v63  ;;  %577 = vmatprep.mubr.msk.f32.mxu1 %vm69_vm0, %v51_v0 }
  0x48   :  { %615 = vmatprep.mubr.msk.f32.mxu0 %vm69_vm0, %v31_v1 }
  0x4a   :  { %578 = vmatmul.mubr.msk.f32.gmra.mrb[2].mxu1 %vm69_vm0, %v52_v2 }
  0x4b   :  { %616 = vmatmul.mubr.msk.f32.gmra.mrb[2].mxu0 %vm69_vm0, %v32_v3 }
  0x89   :  { %v367_v4 = vpop.permute.xlu0 %366 }
  0x8a   :  { %v377_v5 = vpop.permute.xlu1 %376 }
  0x91   :  { %v372_v6 = vpop.permute.xlu0 %371  ;;  %v382_v7 = vpop.permute.xlu1 %381 }
  0x95   :  { %v399_v19 = vpop.permute.xlu0 %398  ;;  %v404_v23 = vpop.permute.xlu1 %403 }
  0x99   :  { %v409_v33 = vpop.permute.xlu0 %408  ;;  %v414_v35 = vpop.permute.xlu1 %413 }
  0x9d   :  { %v433_v46 = vpop.permute.xlu0 %432 }
  0x9e   :  { %v438_v48 = vrot.slane %v433_v46, %v437_v44 }
 0x119   :  { %v576_v8 = vpop.f32.mrb[0].mxu1 }
 0x11a   :  { %v614_v9 = vpop.f32.mrb[0].mxu0  ;;  %v196_v10 = vpop.f32.mrb[1].mxu1 }
 0x11b   :  { %v347_v11 = vadd.f32 %v614_v9, %v576_v8  ;;  %v341_v12 = vpop.f32.mrb[1].mxu0 }
 0x11c   :  { %v342_v13 = vadd.f32 %v341_v12, %v196_v10 }
 0x11d   :  { %v385_v14 = vadd.f32 %v372_v6, %v347_v11  ;;  %v579_v15 = vpop.f32.mrb[2].mxu1 }
 0x11e   :  { %v384_v16 = vadd.f32 %v367_v4, %v342_v13  ;;  %v617_v17 = vpop.f32.mrb[2].mxu0  ;;  %v206_v18 = vpop.f32.mrb[3].mxu1 }
 0x11f   :  { %v389_v20 = vmax.f32 %v385_v14, 0.0  ;;  %v357_v21 = vadd.f32 %v617_v17, %v579_v15  ;;  %v351_v22 = vpop.f32.mrb[3].mxu0 }
 0x120   :  { %v388_v24 = vmax.f32 %v384_v16, 0.0  ;;  %v352_v25 = vadd.f32 %v351_v22, %v206_v18 }
 0x121   :  { %v417_v26 = vmul.f32 %v404_v23, %v389_v20  ;;  %v387_v27 = vadd.f32 %v382_v7, %v357_v21 }
 0x122   :  { %v416_v28 = vmul.f32 %v399_v19, %v388_v24  ;;  %v386_v29 = vadd.f32 %v377_v5, %v352_v25 }
 0x123   :  { %v391_v31 = vmax.f32 %v387_v27, 0.0 }
 0x124   :  { %v420_v30 = vadd.f32 %v417_v26, %v416_v28  ;;  %v390_v32 = vmax.f32 %v386_v29, 0.0 }
 0x125   :  { %v419_v36 = vmul.f32 %v414_v35, %v391_v31 }
 0x126   :  { %v418_v34 = vmul.f32 %v409_v33, %v390_v32 }
 0x128   :  { %v421_v37 = vadd.f32 %v420_v30, %v418_v34 }
 0x12a   :  { %v422_v39 = vadd.f32 %v421_v37, %v419_v36 }
 0x12c   :  { %v423_v40 = vrot.slane %v422_v39, 4 }
 0x12e   :  { %v424_v42 = vadd.f32 %v423_v40, %v422_v39 }
 0x130   :  { %v425_v43 = vrot.slane %v424_v42, 2 }
 0x132   :  { %v426_v45 = vadd.f32 %v425_v43, %v424_v42 }
 0x134   :  { %v427_v47 = vrot.slane %v426_v45, 1 }
 0x136   :  { %v428_v49 = vadd.f32 %v427_v47, %v426_v45 }
 0x138   :  { %v439_v50 = vadd.f32 %v438_v48, %v428_v49 }
 0x13a   :  { %v501_v51 = vmul.f32 -1.442695, %v439_v50 }
 0x13c   :  { %722 = vpow2.f32 %v501_v51 }
 0x146   :  { %v723_v52 = vpop.eup %722 }
 0x147   :  { %v443_v53 = vadd.f32 1.0, %v723_v52 }
 0x149   :  { %724 = vrcp.f32 %v443_v53 }
 0x153   :  { %v725_v54 = vpop.eup %724 }
 0x154   :  { %446 = vst [vmem:[#allocation3] sm:$0x1] %v725_v54 }
 0x155   :  { %737 = shalt.err (!%p734_p4)
}
 0x156   :  { %s738_s24 = scalar_lea.hbm %s1036_s7, 16 }
 0x157   :  { %p739_p5 = scmp.ne.s32.totalorder %s1036_s7, %s738_s24  ;;  %p742_p6 = scmp.lt.u32.totalorder %s738_s24, %s1036_s7 }
 0x159   :  { %p744_p7 = pnand %p742_p6, %p739_p5 }
 0x15b   :  { %747 = shalt.err (!%p744_p7)
}
 0x15c   :  { %456 = dma.vmem_to_hbm [thread:$0]  %s454_s3, 16, %s1036_s7, [#allocation4]  }
 0x15d   :  { %748 = dma.done.wait [#allocation4], 16  }
 0x15e   :  { %749 = vsyncadd [#allocation4], 4294967280 }
 0x15f   :  { %460 = vsyncpa [#allocation4], 1 }

</bundles_post_ra>
